<compile_context>
chip_gen: v6e
topology: v6e:2x2x1
jax: 0.10.0
libtpu: 0.0.40
codegen_flags: <defaults>
</compile_context>

<pallas_src>
import math
from functools import partial

import numpy as np
import jax
import jax.numpy as jnp
from jax.experimental import pallas as pl
from jax.experimental.pallas import tpu as pltpu

LANE = 128   # vreg lane width  -> output/N dims padded to this
SUB = 8      # vreg sublane count -> K / batch-tile granularity


def _round_up(x, m):
    return (x + m - 1) // m * m


def mlp_kernel(x_ref, p_ref, o_ref, *, in_size, kp):
    """One batch tile through the fused 3-layer MLP.

    x_ref : (TB, in_size)     activations (un-padded feature dim)
    p_ref : (3, kp + 8, Np)   packed params: rows [:K] = W_l, row kp = b_l
    o_ref : (TB, Np)          lane-dense (Np % 128 == 0) output tile
    """
    cdt = p_ref.dtype               # matmul operand dtype (f32 or bf16)
    x = x_ref[...].astype(cdt)

    # Layer 1: Linear + ReLU (MXU matmul, f32 accumulation; epilogue on VPU in f32)
    w1 = p_ref[0, :in_size, :]
    b1 = p_ref[0, kp:kp + 1, :].astype(jnp.float32)
    h1 = jnp.maximum(jnp.dot(x, w1, preferred_element_type=jnp.float32) + b1, 0.0)

    # Layer 2: Linear + ReLU.  h1 lanes >= hidden are exactly 0 (zero-padded
    # weight cols / bias + ReLU), and w slab rows >= hidden are 0, so slicing
    # K back to kp (a multiple of 8) is exact.
    w2 = p_ref[1, :kp, :]
    b2 = p_ref[1, kp:kp + 1, :].astype(jnp.float32)
    h2 = jnp.maximum(
        jnp.dot(h1[:, :kp].astype(cdt), w2, preferred_element_type=jnp.float32) + b2,
        0.0)

    # Layer 3: Linear (no activation)
    w3 = p_ref[2, :kp, :]
    b3 = p_ref[2, kp:kp + 1, :].astype(jnp.float32)
    out = jnp.dot(h2[:, :kp].astype(cdt), w3, preferred_element_type=jnp.float32) + b3

    o_ref[...] = out.astype(o_ref.dtype)


def pack_params(w1, b1, w2, b2, w3, b3, dtype=jnp.float32):
    """Pack 3 weights + 3 biases into one (3, kp + 8, n_pad) slab (done ONCE, in numpy).

    Only the output/lane dim is padded to 128; contraction dims pad to a multiple
    of 8.  Bias of layer l lives in row kp of slab l.  Zero padding keeps the math exact.
    """
    w1, b1, w2, b2, w3, b3 = (np.asarray(a, np.float32) for a in (w1, b1, w2, b2, w3, b3))
    in_size, hidden = w1.shape
    out_size = w3.shape[1]
    kp = _round_up(max(in_size, hidden), SUB)
    n_pad = _round_up(max(hidden, out_size), LANE)
    packed = np.zeros((3, kp + SUB, n_pad), np.float32)
    for l, (w, b) in enumerate(((w1, b1), (w2, b2), (w3, b3))):
        k, n = w.shape
        packed[l, :k, :n] = w
        packed[l, kp, :n] = b.reshape(-1)
    return jnp.asarray(packed, dtype=dtype), kp, n_pad


def _pick_batch_tile(batch):
    """Batch tile: up to 512 rows; guarantee >= 2 grid steps when batch >= 16
    so both v7x TensorCores get work on the 'parallel' batch axis."""
    cap = 512
    if batch >= 16:
        return min(_round_up(pl.cdiv(batch, 2), SUB), cap)
    return _round_up(max(batch, 1), SUB)


@partial(jax.jit, static_argnames=("in_size", "output_size", "kp", "n_pad"))
def _forward(x, packed, *, in_size, output_size, kp, n_pad):
    x = x.astype(jnp.float32)
    batch = x.shape[0]
    tb = _pick_batch_tile(batch)
    grid = (pl.cdiv(batch, tb),)

    out_p = pl.pallas_call(
        partial(mlp_kernel, in_size=in_size, kp=kp),
        out_shape=jax.ShapeDtypeStruct((batch, n_pad), jnp.float32),
        grid=grid,
        in_specs=[
            # Activations: streamed (tb, in_size) tiles over the batch axis.
            pl.BlockSpec((tb, in_size), lambda i: (i, 0)),
            # Packed params: grid-invariant block -> VMEM resident, one DMA.
            # TODO(synk): if hidden size is ever scaled to ~2K, single-buffer this
            # block (pipeline_mode=pl.Buffered(1)) or stream K-tiles for v7x VMEM.
            pl.BlockSpec(packed.shape, lambda i: (0, 0, 0)),
        ],
        # Lane-dense output tile -> unmasked vector stores.
        out_specs=pl.BlockSpec((tb, n_pad), lambda i: (i, 0)),
        compiler_params=pltpu.CompilerParams(
            dimension_semantics=("parallel",),     # batch tiles are independent
            vmem_limit_bytes=32 * 1024 * 1024,     # headroom above v5e's 16 MiB default
        ),
    )(x, packed)

    # Slice away output-feature lane padding (batch is never padded).
    return out_p[:, :output_size]


def init_linear_params(key, in_features, out_features):
    # PyTorch nn.Linear default init: U(-1/sqrt(in), 1/sqrt(in)); stored (in, out).
    kw, kb = jax.random.split(key)
    bound = 1.0 / math.sqrt(in_features)
    w = jax.random.uniform(kw, (in_features, out_features), jnp.float32, -bound, bound)
    b = jax.random.uniform(kb, (1, out_features), jnp.float32, -bound, bound)
    return w, b


class BasicDNN:
    """JAX/Pallas port of the PyTorch BasicDNN forward pass (inference only)."""

    def __init__(self, input_size, hidden_size, output_size, *, key,
                 param_dtype=jnp.float32):
        self.input_size = input_size
        self.hidden_size = hidden_size
        self.output_size = output_size
        k1, k2, k3 = jax.random.split(key, 3)
        self.w1, self.b1 = init_linear_params(k1, input_size, hidden_size)
        self.w2, self.b2 = init_linear_params(k2, hidden_size, hidden_size)
        self.w3, self.b3 = init_linear_params(k3, hidden_size, output_size)
        self.set_param_dtype(param_dtype)

    def set_param_dtype(self, dtype):
        # bf16 feeds the MXU natively on v6e/v7x and halves param DMA; the
        # bias-add/ReLU epilogue stays f32 inside the kernel (v5e-friendly).
        self.param_dtype = dtype
        self.packed, self.kp, self.n_pad = pack_params(
            self.w1, self.b1, self.w2, self.b2, self.w3, self.b3, dtype=dtype)

    def forward(self, x):
        return _forward(
            jnp.asarray(x), self.packed,
            in_size=self.input_size, output_size=self.output_size,
            kp=self.kp, n_pad=self.n_pad)

    # TODO(synk): the PyTorch module's training path (Adam optimizer, MSELoss,
    # backward) is not translated; only the inference forward pass is implemented.


if __name__ == "__main__":
    input_size, hidden_size, output_size = 32, 32, 8

    root = jax.random.PRNGKey(0)
    k_model, kx1, kx2 = jax.random.split(root, 3)

    model = BasicDNN(input_size, hidden_size, output_size, key=k_model)

    def ref_forward(x):
        h = jnp.maximum(x @ model.w1 + model.b1, 0.0)
        h = jnp.maximum(h @ model.w2 + model.b2, 0.0)
        return h @ model.w3 + model.b3

    # 1) small batch, single grid step, f32 path (exact vs reference).
    x8 = jax.random.normal(kx1, (8, input_size), jnp.float32)
    out8 = jax.block_until_ready(model.forward(x8))
    assert out8.shape == (8, output_size)
    assert jnp.allclose(out8, ref_forward(x8), atol=1e-5, rtol=1e-5)

    # 2) batch=20 -> 2 grid steps with a ragged last tile (no batch-pad copy).
    x20 = jax.random.normal(kx2, (20, input_size), jnp.float32)
    out20 = jax.block_until_ready(model.forward(x20))
    assert out20.shape == (20, output_size)
    assert jnp.allclose(out20, ref_forward(x20), atol=1e-5, rtol=1e-5)

    # 3) bf16-MXU fast path (v6e/v7x); f32 accumulation, relaxed tolerance.
    model.set_param_dtype(jnp.bfloat16)
    out_bf = jax.block_until_ready(model.forward(x8))
    assert jnp.allclose(out_bf, ref_forward(x8), atol=5e-2, rtol=5e-2)

    print("KERNEL_OK")
</pallas_src>

<mosaic_0001>
module attributes {stable_mosaic.version = 11 : i64} {
  func.func @mlp_kernel(%arg0: i32, %arg1: memref<8x32xf32, #tpu.memory_space<vmem>>, %arg2: memref<3x40x128xf32, #tpu.memory_space<vmem>>, %arg3: memref<8x128xf32, #tpu.memory_space<vmem>>) attributes {dimension_semantics = [#tpu.dimension_semantics<parallel>], iteration_bounds = array<i64: 1>, scalar_prefetch = 0 : i64, scratch_operands = 0 : i64, tpu.core_type = #tpu.core_type<tc>, window_params = [{transform_indices = @transform_0, window_bounds = array<i64: 8, 32>}, {pipeline_mode = #tpu.pipeline_mode<synchronous>, transform_indices = @transform_1, window_bounds = array<i64: 3, 40, 128>}, {transform_indices = @transform_2, window_bounds = array<i64: 8, 128>}]} {
    %c0 = arith.constant 0 : index
    %c0_0 = arith.constant 0 : index
    %0 = vector.load %arg1[%c0, %c0_0] : memref<8x32xf32, #tpu.memory_space<vmem>>, vector<8x32xf32>
    %c0_1 = arith.constant 0 : index
    %c0_2 = arith.constant 0 : index
    %c0_3 = arith.constant 0 : index
    %1 = vector.load %arg2[%c0_1, %c0_2, %c0_3] : memref<3x40x128xf32, #tpu.memory_space<vmem>>, vector<1x32x128xf32>
    %2 = vector.shape_cast %1 : vector<1x32x128xf32> to vector<32x128xf32>
    %c0_4 = arith.constant 0 : index
    %c32 = arith.constant 32 : index
    %c0_5 = arith.constant 0 : index
    %3 = vector.load %arg2[%c0_4, %c32, %c0_5] : memref<3x40x128xf32, #tpu.memory_space<vmem>>, vector<1x1x128xf32>
    %4 = vector.shape_cast %3 : vector<1x1x128xf32> to vector<1x128xf32>
    %cst = arith.constant dense<0.000000e+00> : vector<8x128xf32>
    %5 = tpu.matmul %0, %2, %cst {dimension_numbers = #tpu.dot_dimension_numbers<[1], [0], [0], [1], [0, 0, 1, 1], [], []>} : vector<8x32xf32>, vector<32x128xf32>, vector<8x128xf32> -> vector<8x128xf32>
    %6 = vector.broadcast %4 : vector<1x128xf32> to vector<8x128xf32>
    %7 = arith.addf %5, %6 : vector<8x128xf32>
    %cst_6 = arith.constant 0.000000e+00 : f32
    %8 = vector.broadcast %cst_6 : f32 to vector<8x128xf32>
    %9 = arith.maximumf %7, %8 : vector<8x128xf32>
    %c1 = arith.constant 1 : index
    %c0_7 = arith.constant 0 : index
    %c0_8 = arith.constant 0 : index
    %10 = vector.load %arg2[%c1, %c0_7, %c0_8] : memref<3x40x128xf32, #tpu.memory_space<vmem>>, vector<1x32x128xf32>
    %11 = vector.shape_cast %10 : vector<1x32x128xf32> to vector<32x128xf32>
    %c1_9 = arith.constant 1 : index
    %c32_10 = arith.constant 32 : index
    %c0_11 = arith.constant 0 : index
    %12 = vector.load %arg2[%c1_9, %c32_10, %c0_11] : memref<3x40x128xf32, #tpu.memory_space<vmem>>, vector<1x1x128xf32>
    %13 = vector.shape_cast %12 : vector<1x1x128xf32> to vector<1x128xf32>
    %14 = vector.extract_strided_slice %9 {offsets = [0, 0], sizes = [8, 32], strides = [1, 1]} : vector<8x128xf32> to vector<8x32xf32>
    %cst_12 = arith.constant dense<0.000000e+00> : vector<8x128xf32>
    %15 = tpu.matmul %14, %11, %cst_12 {dimension_numbers = #tpu.dot_dimension_numbers<[1], [0], [0], [1], [0, 0, 1, 1], [], []>} : vector<8x32xf32>, vector<32x128xf32>, vector<8x128xf32> -> vector<8x128xf32>
    %16 = vector.broadcast %13 : vector<1x128xf32> to vector<8x128xf32>
    %17 = arith.addf %15, %16 : vector<8x128xf32>
    %cst_13 = arith.constant 0.000000e+00 : f32
    %18 = vector.broadcast %cst_13 : f32 to vector<8x128xf32>
    %19 = arith.maximumf %17, %18 : vector<8x128xf32>
    %c2 = arith.constant 2 : index
    %c0_14 = arith.constant 0 : index
    %c0_15 = arith.constant 0 : index
    %20 = vector.load %arg2[%c2, %c0_14, %c0_15] : memref<3x40x128xf32, #tpu.memory_space<vmem>>, vector<1x32x128xf32>
    %21 = vector.shape_cast %20 : vector<1x32x128xf32> to vector<32x128xf32>
    %c2_16 = arith.constant 2 : index
    %c32_17 = arith.constant 32 : index
    %c0_18 = arith.constant 0 : index
    %22 = vector.load %arg2[%c2_16, %c32_17, %c0_18] : memref<3x40x128xf32, #tpu.memory_space<vmem>>, vector<1x1x128xf32>
    %23 = vector.shape_cast %22 : vector<1x1x128xf32> to vector<1x128xf32>
    %24 = vector.extract_strided_slice %19 {offsets = [0, 0], sizes = [8, 32], strides = [1, 1]} : vector<8x128xf32> to vector<8x32xf32>
    %cst_19 = arith.constant dense<0.000000e+00> : vector<8x128xf32>
    %25 = tpu.matmul %24, %21, %cst_19 {dimension_numbers = #tpu.dot_dimension_numbers<[1], [0], [0], [1], [0, 0, 1, 1], [], []>} : vector<8x32xf32>, vector<32x128xf32>, vector<8x128xf32> -> vector<8x128xf32>
    %26 = vector.broadcast %23 : vector<1x128xf32> to vector<8x128xf32>
    %27 = arith.addf %25, %26 : vector<8x128xf32>
    %c0_20 = arith.constant 0 : index
    %c0_21 = arith.constant 0 : index
    %28 = vector.load %arg3[%c0_20, %c0_21] : memref<8x128xf32, #tpu.memory_space<vmem>>, vector<8x128xf32>
    tpu.vector_store %arg3[%c0_20, %c0_21], %27 {strides = array<i32>} : memref<8x128xf32, #tpu.memory_space<vmem>>, vector<8x128xf32>,
    return
  }
  func.func @transform_0(%arg0: i32) -> (i32, i32) {
    %c0_i32 = arith.constant 0 : i32
    %c0_i32_0 = arith.constant 0 : i32
    return %arg0, %c0_i32 : i32, i32
  }
  func.func @transform_1(%arg0: i32) -> (i32, i32, i32) {
    %c0_i32 = arith.constant 0 : i32
    %c0_i32_0 = arith.constant 0 : i32
    %c0_i32_1 = arith.constant 0 : i32
    %c0_i32_2 = arith.constant 0 : i32
    return %c0_i32, %c0_i32_0, %c0_i32_1 : i32, i32, i32
  }
  func.func @transform_2(%arg0: i32) -> (i32, i32) {
    %c0_i32 = arith.constant 0 : i32
    %c0_i32_0 = arith.constant 0 : i32
    return %arg0, %c0_i32 : i32, i32
  }
}

</mosaic_0001>

<bundles_post_ra>
// kernel: _forward.1
= control target key start
LH: loop header
LB: loop body
LE: loop exit
PB: predicated region body
PF: predicated region fallthrough
CT: control target
= control target key end

     0   :  { %7 = vsyncpa [#allocation3], 0  ;;  %s471_s0 = inlined_call_operand.hbm [shape: f32[8,32], index: 0, kind: input, shape index: {}]   ;;  %s472_s1 = inlined_call_operand.hbm [shape: f32[3,40,128], index: 1, kind: input, shape index: {}]   ;;  %s473_s2 = inlined_call_operand.hbm [shape: f32[8,128], index: 2, kind: output, shape index: {}]  }
   0x1   :  { %8 = vsyncpa [#allocation6], 0 }
   0x2   :  { %9 = vsyncpa [#allocation4], 0  ;;  %s434_s9 = smov [#allocation2]   ;;  %s435_s11 = smov [#allocation5]  }
   0x3   :  { %s16_s10 = sshll.u32 %s434_s9, 4  ;;  %s25_s12 = sshll.u32 %s435_s11, 4  ;;  %s17_s10 = int_to_ptr.vmem [resolvable:$true] %s16_s10  ;;  %s26_s12 = int_to_ptr.vmem [resolvable:$true] %s25_s12 }
   0x4   :  { %s376_s13 = scalar_lea.vmem %s17_s10, 128  ;;  %p381_p1 = scmp.lt.s32.totalorder %s17_s10, %s17_s10 }
   0x5   :  { %p377_p0 = scmp.ne.s32.totalorder %s17_s10, %s376_s13  ;;  %p382_p2 = scmp.lt.s32.totalorder %s376_s13, %s376_s13 }
   0x7   :  { %p383_p3 = por %p382_p2, %p381_p1 }
   0x9   :  { %p384_p4 = pnand %p383_p3, %p377_p0 }
   0xb   :  { %387 = shalt.err (!%p384_p4)
}
   0xc   :  { %19 = dma.hbm_to_vmem [thread:$0]  %s471_s0, 128, %s17_s10, [#allocation3]  }
   0xd   :  { %s396_s16 = scalar_lea.vmem %s26_s12, 1920  ;;  %p401_p6 = scmp.lt.s32.totalorder %s26_s12, %s26_s12 }
   0xe   :  { %p397_p5 = scmp.ne.s32.totalorder %s26_s12, %s396_s16  ;;  %p402_p7 = scmp.lt.s32.totalorder %s396_s16, %s396_s16 }
  0x10   :  { %p403_p8 = por %p402_p7, %p401_p6 }
  0x12   :  { %p404_p9 = pnand %p403_p8, %p397_p5 }
  0x14   :  { %407 = shalt.err (!%p404_p9)
}
  0x15   :  { %s436_s17 = smov 128   ;;  %s437_s18 = smov 8  }
  0x16   :  { %31 = dma.hbm_to_vmem [thread:$0]  %s472_s1, 1920, %s26_s12, [#allocation6], %s436_s17, %s436_s17, %s437_s18  }
  0x17   :  { %428 = dma.done.wait [#allocation3], 128  }
  0x18   :  { %429 = vsyncadd [#allocation3], 4294967168 }
  0x19   :  { %430 = dma.done.wait [#allocation6], 1920  }
  0x1a   :  { %431 = vsyncadd [#allocation6], 4294965376  ;;  %v438_v0 = vmov 0.0   ;;  %vm439_vm0 = vmmov 0   ;;  %v42_v1 = vld [vmem:[#allocation5 + $0x18] sm:$0xff]  ;;  %v41_v2 = vld [vmem:[#allocation5 + $0x10] sm:$0xff] }
  0x1b   :  { %328 = vmatprep.subr.mxu0 %v438_v0  ;;  %336 = vmatprep.mubr.msk.f32.mxu0 %vm439_vm0, %v438_v0  ;;  %v127_v3 = vld [vmem:[#allocation5 + $0x40] sm:$0xff]  ;;  %v40_v4 = vld [vmem:[#allocation5 + $0x8] sm:$0xff]  ;;  %v38_v6 = vld [vmem:[#allocation2] sm:$0xff]  ;;  %vm48_vm1 = vcmask 261120   ;;  %s440_s0 = smov [#allocation7]  }
  0x1c   :  { %339 = vmatprep.subr.mxu1 %v438_v0  ;;  %347 = vmatprep.mubr.msk.f32.mxu1 %vm439_vm0, %v438_v0  ;;  %v39_v5 = vld [vmem:[#allocation5] sm:$0xff]  ;;  %v126_v7 = vld [vmem:[#allocation5 + $0x38] sm:$0xff]  ;;  %v125_v8 = vld [vmem:[#allocation5 + $0x30] sm:$0xff]  ;;  %s297_s1 = sshll.u32 %s440_s0, 4  ;;  %s298_s1 = int_to_ptr.vmem [resolvable:$true] %s297_s1 }
  0x1d   :  { %329 = vmatpush3.msra.mxu0 %v42_v1  ;;  %340 = vmatpush3.msra.mxu1 %v127_v3  ;;  %v124_v9 = vld [vmem:[#allocation5 + $0x28] sm:$0xff]  ;;  %v307_v11 = vld [vmem:[#allocation5 + $0x20] ss:$0 sm:$0xff]  ;;  %v209_v17 = vld [vmem:[#allocation5 + $0x58] sm:$0xff]  ;;  %s408_s21 = scalar_lea.vmem %s298_s1, 128  ;;  %p413_p11 = scmp.lt.s32.totalorder %s298_s1, %s298_s1 }
  0x1e   :  { %330 = vmatprep.subr.mxu0 %v438_v0  ;;  %341 = vmatprep.subr.mxu1 %v438_v0  ;;  %v211_v10 = vld [vmem:[#allocation5 + $0x68] sm:$0xff]  ;;  %v210_v16 = vld [vmem:[#allocation5 + $0x60] sm:$0xff]  ;;  %v208_v18 = vld [vmem:[#allocation5 + $0x50] sm:$0xff]  ;;  %p409_p10 = scmp.ne.s32.totalorder %s298_s1, %s408_s21  ;;  %p414_p12 = scmp.lt.s32.totalorder %s408_s21, %s408_s21 }
  0x1f   :  { %331 = vmatpush3.msra.mxu0 %v41_v2  ;;  %342 = vmatpush3.msra.mxu1 %v126_v7  ;;  %v309_v19 = vld [vmem:[#allocation5 + $0x48] ss:$0 sm:$0xff]  ;;  %v311_v24 = vld [vmem:[#allocation5 + $0x70] ss:$0 sm:$0xff] }
  0x20   :  { %332 = vmatprep.subr.mxu0 %v438_v0  ;;  %343 = vmatprep.subr.mxu1 %v438_v0  ;;  %p415_p13 = por %p414_p12, %p413_p11 }
  0x21   :  { %333 = vmatpush3.msra.mxu0 %v40_v4  ;;  %344 = vmatpush3.msra.mxu1 %v125_v8 }
  0x22   :  { %334 = vmatprep.subr.mxu0 %v438_v0  ;;  %345 = vmatprep.subr.mxu1 %v438_v0  ;;  %p416_p0 = pnand %p415_p13, %p409_p10 }
  0x23   :  { %335 = vmatpush3.msra.mxu0 %v39_v5  ;;  %346 = vmatpush3.msra.mxu1 %v124_v9 }
  0x24   :  { %337 = vmatmul.mubr.msk.f32.vlgmr.msra.gmra.mxu0 %vm48_vm1, %v38_v6  ;;  %350 = vmatprep.subr.mxu0 %v438_v0 }
  0x25   :  { %358 = vmatprep.mubr.msk.f32.mxu0 %vm439_vm0, %v438_v0  ;;  %351 = vmatpush3.msra.mxu0 %v211_v10 }
  0x26   :  { %352 = vmatprep.subr.mxu0 %v438_v0 }
  0x27   :  { %353 = vmatpush3.msra.mxu0 %v210_v16 }
  0x28   :  { %354 = vmatprep.subr.mxu0 %v438_v0 }
  0x29   :  { %355 = vmatpush3.msra.mxu0 %v209_v17 }
  0x2a   :  { %356 = vmatprep.subr.mxu0 %v438_v0 }
  0x2b   :  { %357 = vmatpush3.msra.mxu0 %v208_v18 }
  0xe4   :  { %v118_v12 = vpop.f32.mrf.mxu0 }
  0xe5   :  { %v119_v13 = vadd.f32 %v307_v11, %v118_v12 }
  0xe6   :  { %v338_v14 = vpop.f32.mrf.mxu0 }
  0xe7   :  { %v122_v15 = vmax.f32 %v119_v13, 0.0 }
  0xe9   :  { %348 = vmatmul.mubr.msk.f32.vlgmr.msra.gmra.mxu1 %vm48_vm1, %v122_v15 }
 0x1a9   :  { %v202_v20 = vpop.f32.mrf.mxu1 }
 0x1aa   :  { %v203_v21 = vadd.f32 %v309_v19, %v202_v20 }
 0x1ab   :  { %v349_v22 = vpop.f32.mrf.mxu1 }
 0x1ac   :  { %v206_v23 = vmax.f32 %v203_v21, 0.0 }
 0x1ae   :  { %359 = vmatmul.mubr.msk.f32.vlgmr.msra.gmra.mxu0 %vm48_vm1, %v206_v23 }
 0x26e   :  { %v286_v25 = vpop.f32.mrf.mxu0 }
 0x26f   :  { %v287_v26 = vadd.f32 %v311_v24, %v286_v25 }
 0x270   :  { %v360_v27 = vpop.f32.mrf.mxu0 }
 0x271   :  { %290 = vst [vmem:[#allocation7] sm:$0xff] %v287_v26 }
 0x272   :  { %419 = shalt.err (!%p416_p0)
}
 0x273   :  { %300 = dma.vmem_to_hbm [thread:$0]  %s298_s1, 128, %s473_s2, [#allocation4]  }
 0x274   :  { %432 = dma.done.wait [#allocation4], 128  }
 0x275   :  { %433 = vsyncadd [#allocation4], 4294967168 }
 0x276   :  { %304 = vsyncpa [#allocation3], 1 }
 0x277   :  { %305 = vsyncpa [#allocation6], 1 }
 0x278   :  { %306 = vsyncpa [#allocation4], 1 }

</bundles_post_ra>
